<compile_context>
chip_gen: v5e
topology: v5e:2x2
jax: 0.10.0
libtpu: 0.0.40
codegen_flags: <defaults>
</compile_context>

<pallas_src>
import functools
import math

import jax
import jax.numpy as jnp
from jax.experimental import pallas as pl
from jax.experimental.pallas import tpu as pltpu


def _permute_kernel(x_ref, o_ref, *, reduced_perm):
    if reduced_perm == tuple(range(len(reduced_perm))):
        # Pure relayout handled by the index_maps.
        # TODO(synk): a DMA-side copy (pltpu.sync_copy / manual HBM->HBM DMA) would free
        # vld/vst bundle slots here; kept as a vreg copy for lowering robustness.
        o_ref[...] = x_ref[...]
    else:
        # Minimal transpose over the few non-squeezed dims only.
        o_ref[...] = jnp.transpose(x_ref[...], reduced_perm)


def _largest_divisor_leq(n, cap):
    cap = int(min(n, max(1, cap)))
    for t in range(cap, 0, -1):
        if n % t == 0:
            return t
    return 1


def pallas_permute(x, args):
    """Equivalent of torch Permute(*args): x.permute(0, *args).contiguous()."""
    n = x.ndim
    perm = (0,) + tuple(int(a) for a in args)
    perm = tuple(p if p >= 0 else p + n for p in perm)
    assert sorted(perm) == list(range(n)), "invalid permutation"

    out_shape = tuple(x.shape[p] for p in perm)
    if perm == tuple(range(n)):
        return x  # identity permutation (contiguity is a no-op in JAX)

    # ---- Wrapper-side simplification: drop size-1 dims, coalesce adjacent runs ----
    keep = [d for d in range(n) if x.shape[d] != 1]
    if len(keep) <= 1:
        return x.reshape(out_shape)          # permutation only moves size-1 dims
    new_idx = {d: i for i, d in enumerate(keep)}
    perm_k = tuple(new_idx[p] for p in perm if p in new_idx)
    shape_k = tuple(x.shape[d] for d in keep)
    if perm_k == tuple(range(len(keep))):
        return x.reshape(out_shape)          # effectively identity after squeezing

    # Group input dims that are consecutive in input AND consecutive/in-order in output.
    groups = []
    cur = [perm_k[0]]
    for j in range(1, len(perm_k)):
        if perm_k[j] == perm_k[j - 1] + 1:
            cur.append(perm_k[j])
        else:
            groups.append(cur)
            cur = [perm_k[j]]
    groups.append(cur)

    groups_in_order = sorted(groups, key=lambda g: g[0])     # input order
    shape_c = tuple(math.prod(shape_k[d] for d in g) for g in groups_in_order)
    gid = {tuple(g): i for i, g in enumerate(groups_in_order)}
    perm_c = tuple(gid[tuple(g)] for g in groups)             # output order
    m = len(shape_c)

    x_c = x.reshape(shape_c)
    out_shape_c = tuple(shape_c[p] for p in perm_c)
    inv_perm_c = [0] * m
    for j, p in enumerate(perm_c):
        inv_perm_c[p] = j

    itemsize = jnp.dtype(x.dtype).itemsize

    # Dims the (8,128) tiling rule constrains on either side.
    lane_dims = {m - 1, perm_c[m - 1]}        # multiple of 128 or full
    sublane_dims = {m - 2, perm_c[m - 2]}     # multiple of sublane granule or full
    constrained = lane_dims | sublane_dims

    # Dtype-aware sublane granule (packed sublanes for sub-32-bit dtypes).
    sub_g = max(8, 32 // itemsize)

    def _granule(d):
        if d in lane_dims:
            return 128
        if d in sublane_dims:
            return sub_g
        return 1

    # Generation-aware block budget and VMEM ceiling.
    try:
        vmem_cap = int(pltpu.get_tpu_info().vmem_capacity_bytes)
    except Exception:
        vmem_cap = 64 << 20                    # conservative (v7x)
    block_budget = (8 << 20) if vmem_cap >= (96 << 20) else (6 << 20)
    vmem_cap_limit = (vmem_cap * 3) // 4       # ~96 MiB on v5e/v6e, 48 MiB on v7x

    # Block: full along constrained dims, 1 elsewhere (grown below).
    block_in = [shape_c[d] if d in constrained else 1 for d in range(m)]

    def _block_bytes():
        return math.prod(block_in) * itemsize

    def _can_halve(d):
        g = _granule(d)
        t = block_in[d]
        return t % (2 * g) == 0 and shape_c[d] % (t // 2) == 0

    # Shrink toward the budget: prefer sublane/middle constrained dims over lane dims.
    while _block_bytes() > block_budget:
        non_lane = [d for d in constrained if d not in lane_dims and _can_halve(d)]
        lane = [d for d in lane_dims if _can_halve(d)]
        if non_lane:
            cand = max(non_lane, key=lambda d: block_in[d])
        elif lane:
            cand = max(lane, key=lambda d: block_in[d])
        else:
            break  # cannot tile further without breaking alignment; rely on vmem_limit
        block_in[cand] //= 2

    # Grow unconstrained (grid) dims into the block up to the budget (fewer grid steps,
    # larger DMAs).  Innermost-in-input first.
    if _block_bytes() < block_budget:
        for d in sorted(range(m), reverse=True):
            if d in constrained:
                continue
            per_unit = max(_block_bytes() // block_in[d], 1)
            max_units = block_budget // per_unit
            if max_units <= 1:
                continue
            block_in[d] = _largest_divisor_leq(shape_c[d], max_units)

    block_bytes = _block_bytes()

    def _nblocks(d):
        return pl.cdiv(shape_c[d], block_in[d])

    # Grid over dims with >1 block, iterated in output-major order so output blocks are
    # written in layout order.  (If everything fits one block the whole op is a single
    # kernel invocation.)
    grid_dims = [d for d in range(m) if _nblocks(d) > 1]
    grid_dims = sorted(grid_dims, key=lambda d: inv_perm_c[d])
    grid = tuple(_nblocks(d) for d in grid_dims) if grid_dims else (1,)
    pos = {d: i for i, d in enumerate(grid_dims)}

    def in_index_map(*g):
        return tuple(g[pos[d]] if d in pos else 0 for d in range(m))

    def out_index_map(*g):
        return tuple(g[pos[perm_c[j]]] if perm_c[j] in pos else 0 for j in range(m))

    def _kept(d):
        return d in constrained or block_in[d] > 1

    in_block_shape = tuple(block_in[d] if _kept(d) else pl.Squeezed() for d in range(m))
    out_block_shape = tuple(
        block_in[perm_c[j]] if _kept(perm_c[j]) else pl.Squeezed() for j in range(m)
    )

    # Permutation restricted to the non-squeezed dims the kernel actually sees.
    kept_in = [d for d in range(m) if _kept(d)]                        # input order
    kept_out_src = [perm_c[j] for j in range(m) if _kept(perm_c[j])]   # output order
    reduced_perm = tuple(kept_in.index(d) for d in kept_out_src)

    kernel = functools.partial(_permute_kernel, reduced_perm=reduced_perm)

    # Deeper input pipelining when steps are many and blocks small (latency-bound DMAs).
    n_steps = math.prod(grid)
    in_bufs = 3 if (block_bytes < (1 << 20) and n_steps >= 4) else 2
    if in_bufs > 2:
        try:
            in_spec = pl.BlockSpec(
                in_block_shape, in_index_map, pipeline_mode=pl.Buffered(in_bufs)
            )
        except Exception:
            in_spec = pl.BlockSpec(in_block_shape, in_index_map)
            in_bufs = 2
    else:
        in_spec = pl.BlockSpec(in_block_shape, in_index_map)

    vmem_limit = int(
        min(max((in_bufs + 2) * block_bytes + (8 << 20), 32 << 20), vmem_cap_limit)
    )

    # TODO(synk): when out_shape_c[-1] < 128, a wrapper-side flatten of trailing output
    # dims (+ 2xbf16->u32 packing) would make stores fully lane-dense; it needs an extra
    # in-kernel relayout so it is left out here to keep lowering simple and robust.

    out_c = pl.pallas_call(
        kernel,
        out_shape=jax.ShapeDtypeStruct(out_shape_c, x.dtype),
        grid_spec=pltpu.PrefetchScalarGridSpec(
            num_scalar_prefetch=0,
            grid=grid,
            in_specs=[in_spec],
            out_specs=pl.BlockSpec(out_block_shape, out_index_map),
        ),
        compiler_params=pltpu.CompilerParams(
            dimension_semantics=("parallel",) * len(grid),
            vmem_limit_bytes=vmem_limit,
        ),
        cost_estimate=pl.CostEstimate(
            flops=0,
            transcendentals=0,
            bytes_accessed=2 * x.size * itemsize,
        ),
    )(x_c)

    return out_c.reshape(out_shape)


class Permute:
    """Mirror of the PyTorch module's interface (stateless, no parameters)."""

    def __init__(self, *args, **kwargs):
        self.args = args
        self.kwargs = kwargs

    def __call__(self, x):
        return pallas_permute(x, self.args)


if __name__ == "__main__":
    key = jax.random.PRNGKey(0)

    # NCHW input, small shapes: batch=2, channels=4, spatial=16
    x = jax.random.normal(key, (2, 4, 16, 16), dtype=jnp.float32)
    out = jax.block_until_ready(Permute(2, 3, 1)(x))          # NCHW -> NHWC
    ref = jnp.transpose(x, (0, 2, 3, 1))
    assert out.shape == ref.shape and out.dtype == ref.dtype
    assert jnp.array_equal(out, ref), "mismatch vs reference permute (NCHW->NHWC)"

    # Pure last-two-dim transpose: Permute(2, 1) on (B, S, D)
    x2 = jax.random.normal(jax.random.PRNGKey(1), (2, 8, 32), dtype=jnp.float32)
    out2 = jax.block_until_ready(Permute(2, 1)(x2))
    ref2 = jnp.transpose(x2, (0, 2, 1))
    assert jnp.array_equal(out2, ref2), "mismatch vs reference permute (3D)"

    # Middle-dim swap with trailing dims unmoved: after coalescing this becomes a single
    # large block with a cheap in-VMEM shuffle instead of many tiny DMA steps.
    x3 = jax.random.normal(jax.random.PRNGKey(2), (2, 3, 4, 8, 32), dtype=jnp.float32)
    out3 = jax.block_until_ready(Permute(2, 1, 3, 4)(x3))
    ref3 = jnp.transpose(x3, (0, 2, 1, 3, 4))
    assert jnp.array_equal(out3, ref3), "mismatch vs reference permute (5D coalesced)"

    # Size-1 dim handling + general perm: (N, C=1, H, W) -> (N, W, C, H)
    x4 = jax.random.normal(jax.random.PRNGKey(3), (2, 1, 8, 16), dtype=jnp.float32)
    out4 = jax.block_until_ready(Permute(3, 1, 2)(x4))
    ref4 = jnp.transpose(x4, (0, 3, 1, 2))
    assert jnp.array_equal(out4, ref4), "mismatch vs reference permute (size-1 dims)"

    print("KERNEL_OK")
</pallas_src>

<mosaic_0001>
module attributes {stable_mosaic.version = 11 : i64} {
  func.func @_permute_kernel(%arg0: i32, %arg1: memref<2x4x256xf32, #tpu.memory_space<vmem>>, %arg2: memref<2x256x4xf32, #tpu.memory_space<vmem>>) attributes {dimension_semantics = [#tpu.dimension_semantics<parallel>], iteration_bounds = array<i64: 1>, scalar_prefetch = 0 : i64, scratch_operands = 0 : i64, tpu.core_type = #tpu.core_type<tc>, window_params = [{pipeline_mode = #tpu.pipeline_mode<synchronous>, transform_indices = @transform_0, window_bounds = array<i64: 2, 4, 256>}, {pipeline_mode = #tpu.pipeline_mode<synchronous>, transform_indices = @transform_1, window_bounds = array<i64: 2, 256, 4>}]} {
    %c0 = arith.constant 0 : index
    %c0_0 = arith.constant 0 : index
    %c0_1 = arith.constant 0 : index
    %0 = vector.load %arg1[%c0, %c0_0, %c0_1] : memref<2x4x256xf32, #tpu.memory_space<vmem>>, vector<2x4x256xf32>
    %1 = tpu.transpose %0, [0, 2, 1] : vector<2x4x256xf32> -> vector<2x256x4xf32>
    %c0_2 = arith.constant 0 : index
    %c0_3 = arith.constant 0 : index
    %c0_4 = arith.constant 0 : index
    %2 = vector.load %arg2[%c0_2, %c0_3, %c0_4] : memref<2x256x4xf32, #tpu.memory_space<vmem>>, vector<2x256x4xf32>
    tpu.vector_store %arg2[%c0_2, %c0_3, %c0_4], %1 {strides = array<i32>} : memref<2x256x4xf32, #tpu.memory_space<vmem>>, vector<2x256x4xf32>,
    return
  }
  func.func @transform_0(%arg0: i32) -> (i32, i32, i32) {
    %c0_i32 = arith.constant 0 : i32
    %c0_i32_0 = arith.constant 0 : i32
    %c0_i32_1 = arith.constant 0 : i32
    %c0_i32_2 = arith.constant 0 : i32
    return %c0_i32, %c0_i32_0, %c0_i32_1 : i32, i32, i32
  }
  func.func @transform_1(%arg0: i32) -> (i32, i32, i32) {
    %c0_i32 = arith.constant 0 : i32
    %c0_i32_0 = arith.constant 0 : i32
    %c0_i32_1 = arith.constant 0 : i32
    %c0_i32_2 = arith.constant 0 : i32
    return %c0_i32, %c0_i32_0, %c0_i32_1 : i32, i32, i32
  }
}

</mosaic_0001>

<bundles_post_ra>
// kernel: tpu_custom_call.1
= control target key start
LH: loop header
LB: loop body
LE: loop exit
PB: predicated region body
PF: predicated region fallthrough
CT: control target
= control target key end

     0   :  { %6 = vsyncpa [#allocation3], 0  ;;  %s267_s9 = smov [#allocation2]   ;;  %s268_s11 = smov 128   ;;  %s539_s0 = inlined_call_operand.hbm [shape: f32[2,4,256], index: 0, kind: input, shape index: {}]   ;;  %s540_s1 = inlined_call_operand.vmem [shape: f32[2,256,4], index: 1, kind: output, shape index: {}]  }
   0x1   :  { %s11_s8 = sshll.u32 %s539_s0, 4  ;;  %s13_s10 = sshll.u32 %s267_s9, 4  ;;  %s12_s8 = int_to_ptr.hbm [resolvable:$true] %s11_s8  ;;  %s14_s10 = int_to_ptr.vmem [resolvable:$true] %s13_s10 }
   0x2   :  { %s269_s12 = smov 8  }
   0x3   :  { %19 = dma.hbm_to_vmem [thread:$0]  %s12_s8, 256, %s14_s10, [#allocation3], %s268_s11, %s268_s11, %s269_s12  }
   0x4   :  { %265 = dma.done.wait [#allocation3], 256  }
   0x5   :  { %266 = vsyncadd [#allocation3], 4294967040  ;;  %v25_v0 = vld [vmem:[#allocation2 + $0x8] sm:$0xff]  ;;  %v24_v1 = vld [vmem:[#allocation2] sm:$0xff]  ;;  %vm167_vm0 = vcmask 31744  }
   0x6   :  { %32 = vst [vmem:[#allocation1 + $0x10] ss:$2 sm:$0xff] %v25_v0 }
   0x7   :  { %28 = vst [vmem:[#allocation1] ss:$2 sm:$0xff] %v24_v1 }
   0xd   :  { %v33_v2 = vld.sshfl [vmem:[#allocation1 + $0x10] sm:$0xff pattern:$0x75316420]  ;;  %v34_v4 = vld.sshfl [vmem:[#allocation1 + $0x18] sm:$0xff pattern:$0x75316420] }
   0xe   :  { %103 = vxpose.xlu1.b32.start.end [1/1] (short) %v33_v2, 128  ;;  %v29_v3 = vld.sshfl [vmem:[#allocation1] sm:$0xff pattern:$0x75316420]  ;;  %v30_v5 = vld.sshfl [vmem:[#allocation1 + $0x8] sm:$0xff pattern:$0x75316420] }
   0xf   :  { %39 = vxpose.xlu0.b32.start.end [1/1] (short) %v29_v3, 128 }
  0x8e   :  { %135 = vxpose.xlu1.b32.start.end [1/1] (short) %v34_v4, 128 }
  0x8f   :  { %71 = vxpose.xlu0.b32.start.end [1/1] (short) %v30_v5, 128 }
  0xb2   :  { %v119_v6 = vpop.trf.xlu1 }
  0xb3   :  { %200 = vst.msk [vmem:[%s540_s1 + $0x100] sm:$0xff] %vm167_vm0, %v119_v6  ;;  %v55_v7 = vpop.trf.xlu0 }
  0xb4   :  { %168 = vst.msk [vmem:[%s540_s1] sm:$0xff] %vm167_vm0, %v55_v7 }
  0xba   :  { %v120_v8 = vpop.trf.xlu1 }
  0xbb   :  { %201 = vst.msk [vmem:[%s540_s1 + $0x108] sm:$0xff] %vm167_vm0, %v120_v8  ;;  %v56_v9 = vpop.trf.xlu0 }
  0xbc   :  { %169 = vst.msk [vmem:[%s540_s1 + $0x8] sm:$0xff] %vm167_vm0, %v56_v9 }
  0xc2   :  { %v121_v10 = vpop.trf.xlu1 }
  0xc3   :  { %202 = vst.msk [vmem:[%s540_s1 + $0x110] sm:$0xff] %vm167_vm0, %v121_v10  ;;  %v57_v11 = vpop.trf.xlu0 }
  0xc4   :  { %170 = vst.msk [vmem:[%s540_s1 + $0x10] sm:$0xff] %vm167_vm0, %v57_v11 }
  0xca   :  { %v122_v12 = vpop.trf.xlu1 }
  0xcb   :  { %203 = vst.msk [vmem:[%s540_s1 + $0x118] sm:$0xff] %vm167_vm0, %v122_v12  ;;  %v58_v13 = vpop.trf.xlu0 }
  0xcc   :  { %171 = vst.msk [vmem:[%s540_s1 + $0x18] sm:$0xff] %vm167_vm0, %v58_v13 }
  0xd2   :  { %v123_v14 = vpop.trf.xlu1 }
  0xd3   :  { %204 = vst.msk [vmem:[%s540_s1 + $0x120] sm:$0xff] %vm167_vm0, %v123_v14  ;;  %v59_v15 = vpop.trf.xlu0 }
  0xd4   :  { %172 = vst.msk [vmem:[%s540_s1 + $0x20] sm:$0xff] %vm167_vm0, %v59_v15 }
  0xda   :  { %v124_v16 = vpop.trf.xlu1 }
  0xdb   :  { %205 = vst.msk [vmem:[%s540_s1 + $0x128] sm:$0xff] %vm167_vm0, %v124_v16  ;;  %v60_v17 = vpop.trf.xlu0 }
  0xdc   :  { %173 = vst.msk [vmem:[%s540_s1 + $0x28] sm:$0xff] %vm167_vm0, %v60_v17 }
  0xe2   :  { %v125_v18 = vpop.trf.xlu1 }
  0xe3   :  { %206 = vst.msk [vmem:[%s540_s1 + $0x130] sm:$0xff] %vm167_vm0, %v125_v18  ;;  %v61_v19 = vpop.trf.xlu0 }
  0xe4   :  { %174 = vst.msk [vmem:[%s540_s1 + $0x30] sm:$0xff] %vm167_vm0, %v61_v19 }
  0xea   :  { %v126_v20 = vpop.trf.xlu1 }
  0xeb   :  { %207 = vst.msk [vmem:[%s540_s1 + $0x138] sm:$0xff] %vm167_vm0, %v126_v20  ;;  %v62_v21 = vpop.trf.xlu0 }
  0xec   :  { %175 = vst.msk [vmem:[%s540_s1 + $0x38] sm:$0xff] %vm167_vm0, %v62_v21 }
  0xf2   :  { %v127_v22 = vpop.trf.xlu1 }
  0xf3   :  { %208 = vst.msk [vmem:[%s540_s1 + $0x140] sm:$0xff] %vm167_vm0, %v127_v22  ;;  %v63_v23 = vpop.trf.xlu0 }
  0xf4   :  { %176 = vst.msk [vmem:[%s540_s1 + $0x40] sm:$0xff] %vm167_vm0, %v63_v23 }
  0xfa   :  { %v128_v24 = vpop.trf.xlu1 }
  0xfb   :  { %209 = vst.msk [vmem:[%s540_s1 + $0x148] sm:$0xff] %vm167_vm0, %v128_v24  ;;  %v64_v25 = vpop.trf.xlu0 }
  0xfc   :  { %177 = vst.msk [vmem:[%s540_s1 + $0x48] sm:$0xff] %vm167_vm0, %v64_v25 }
 0x102   :  { %v129_v26 = vpop.trf.xlu1 }
 0x103   :  { %210 = vst.msk [vmem:[%s540_s1 + $0x150] sm:$0xff] %vm167_vm0, %v129_v26  ;;  %v65_v27 = vpop.trf.xlu0 }
 0x104   :  { %178 = vst.msk [vmem:[%s540_s1 + $0x50] sm:$0xff] %vm167_vm0, %v65_v27 }
 0x10a   :  { %v130_v28 = vpop.trf.xlu1 }
 0x10b   :  { %211 = vst.msk [vmem:[%s540_s1 + $0x158] sm:$0xff] %vm167_vm0, %v130_v28  ;;  %v66_v29 = vpop.trf.xlu0 }
 0x10c   :  { %179 = vst.msk [vmem:[%s540_s1 + $0x58] sm:$0xff] %vm167_vm0, %v66_v29 }
 0x112   :  { %v131_v30 = vpop.trf.xlu1 }
 0x113   :  { %212 = vst.msk [vmem:[%s540_s1 + $0x160] sm:$0xff] %vm167_vm0, %v131_v30  ;;  %v67_v31 = vpop.trf.xlu0 }
 0x114   :  { %180 = vst.msk [vmem:[%s540_s1 + $0x60] sm:$0xff] %vm167_vm0, %v67_v31 }
 0x11a   :  { %v132_v32 = vpop.trf.xlu1 }
 0x11b   :  { %213 = vst.msk [vmem:[%s540_s1 + $0x168] sm:$0xff] %vm167_vm0, %v132_v32  ;;  %v68_v33 = vpop.trf.xlu0 }
 0x11c   :  { %181 = vst.msk [vmem:[%s540_s1 + $0x68] sm:$0xff] %vm167_vm0, %v68_v33 }
 0x122   :  { %v133_v34 = vpop.trf.xlu1 }
 0x123   :  { %214 = vst.msk [vmem:[%s540_s1 + $0x170] sm:$0xff] %vm167_vm0, %v133_v34  ;;  %v69_v35 = vpop.trf.xlu0 }
 0x124   :  { %182 = vst.msk [vmem:[%s540_s1 + $0x70] sm:$0xff] %vm167_vm0, %v69_v35 }
 0x12a   :  { %v134_v36 = vpop.trf.xlu1 }
 0x12b   :  { %215 = vst.msk [vmem:[%s540_s1 + $0x178] sm:$0xff] %vm167_vm0, %v134_v36  ;;  %v70_v37 = vpop.trf.xlu0 }
 0x12c   :  { %183 = vst.msk [vmem:[%s540_s1 + $0x78] sm:$0xff] %vm167_vm0, %v70_v37 }
 0x132   :  { %v151_v38 = vpop.trf.xlu1 }
 0x133   :  { %216 = vst.msk [vmem:[%s540_s1 + $0x180] sm:$0xff] %vm167_vm0, %v151_v38  ;;  %v87_v39 = vpop.trf.xlu0 }
 0x134   :  { %184 = vst.msk [vmem:[%s540_s1 + $0x80] sm:$0xff] %vm167_vm0, %v87_v39 }
 0x13a   :  { %v152_v40 = vpop.trf.xlu1 }
 0x13b   :  { %217 = vst.msk [vmem:[%s540_s1 + $0x188] sm:$0xff] %vm167_vm0, %v152_v40  ;;  %v88_v41 = vpop.trf.xlu0 }
 0x13c   :  { %185 = vst.msk [vmem:[%s540_s1 + $0x88] sm:$0xff] %vm167_vm0, %v88_v41 }
 0x142   :  { %v153_v42 = vpop.trf.xlu1 }
 0x143   :  { %218 = vst.msk [vmem:[%s540_s1 + $0x190] sm:$0xff] %vm167_vm0, %v153_v42  ;;  %v89_v43 = vpop.trf.xlu0 }
 0x144   :  { %186 = vst.msk [vmem:[%s540_s1 + $0x90] sm:$0xff] %vm167_vm0, %v89_v43 }
 0x14a   :  { %v154_v44 = vpop.trf.xlu1 }
 0x14b   :  { %219 = vst.msk [vmem:[%s540_s1 + $0x198] sm:$0xff] %vm167_vm0, %v154_v44  ;;  %v90_v45 = vpop.trf.xlu0 }
 0x14c   :  { %187 = vst.msk [vmem:[%s540_s1 + $0x98] sm:$0xff] %vm167_vm0, %v90_v45 }
 0x152   :  { %v155_v46 = vpop.trf.xlu1 }
 0x153   :  { %220 = vst.msk [vmem:[%s540_s1 + $0x1a0] sm:$0xff] %vm167_vm0, %v155_v46  ;;  %v91_v47 = vpop.trf.xlu0 }
 0x154   :  { %188 = vst.msk [vmem:[%s540_s1 + $0xa0] sm:$0xff] %vm167_vm0, %v91_v47 }
 0x15a   :  { %v156_v48 = vpop.trf.xlu1 }
 0x15b   :  { %221 = vst.msk [vmem:[%s540_s1 + $0x1a8] sm:$0xff] %vm167_vm0, %v156_v48  ;;  %v92_v49 = vpop.trf.xlu0 }
 0x15c   :  { %189 = vst.msk [vmem:[%s540_s1 + $0xa8] sm:$0xff] %vm167_vm0, %v92_v49 }
 0x162   :  { %v157_v50 = vpop.trf.xlu1 }
 0x163   :  { %222 = vst.msk [vmem:[%s540_s1 + $0x1b0] sm:$0xff] %vm167_vm0, %v157_v50  ;;  %v93_v51 = vpop.trf.xlu0 }
 0x164   :  { %190 = vst.msk [vmem:[%s540_s1 + $0xb0] sm:$0xff] %vm167_vm0, %v93_v51 }
 0x16a   :  { %v158_v52 = vpop.trf.xlu1 }
 0x16b   :  { %223 = vst.msk [vmem:[%s540_s1 + $0x1b8] sm:$0xff] %vm167_vm0, %v158_v52  ;;  %v94_v53 = vpop.trf.xlu0 }
 0x16c   :  { %191 = vst.msk [vmem:[%s540_s1 + $0xb8] sm:$0xff] %vm167_vm0, %v94_v53 }
 0x172   :  { %v159_v54 = vpop.trf.xlu1 }
 0x173   :  { %224 = vst.msk [vmem:[%s540_s1 + $0x1c0] sm:$0xff] %vm167_vm0, %v159_v54  ;;  %v95_v55 = vpop.trf.xlu0 }
 0x174   :  { %192 = vst.msk [vmem:[%s540_s1 + $0xc0] sm:$0xff] %vm167_vm0, %v95_v55 }
 0x17a   :  { %v160_v56 = vpop.trf.xlu1 }
 0x17b   :  { %225 = vst.msk [vmem:[%s540_s1 + $0x1c8] sm:$0xff] %vm167_vm0, %v160_v56  ;;  %v96_v57 = vpop.trf.xlu0 }
 0x17c   :  { %193 = vst.msk [vmem:[%s540_s1 + $0xc8] sm:$0xff] %vm167_vm0, %v96_v57 }
 0x182   :  { %v161_v58 = vpop.trf.xlu1 }
 0x183   :  { %226 = vst.msk [vmem:[%s540_s1 + $0x1d0] sm:$0xff] %vm167_vm0, %v161_v58  ;;  %v97_v59 = vpop.trf.xlu0 }
 0x184   :  { %194 = vst.msk [vmem:[%s540_s1 + $0xd0] sm:$0xff] %vm167_vm0, %v97_v59 }
 0x18a   :  { %v162_v60 = vpop.trf.xlu1 }
 0x18b   :  { %227 = vst.msk [vmem:[%s540_s1 + $0x1d8] sm:$0xff] %vm167_vm0, %v162_v60  ;;  %v98_v61 = vpop.trf.xlu0 }
 0x18c   :  { %195 = vst.msk [vmem:[%s540_s1 + $0xd8] sm:$0xff] %vm167_vm0, %v98_v61 }
 0x192   :  { %v163_v62 = vpop.trf.xlu1 }
 0x193   :  { %228 = vst.msk [vmem:[%s540_s1 + $0x1e0] sm:$0xff] %vm167_vm0, %v163_v62  ;;  %v99_v63 = vpop.trf.xlu0 }
 0x194   :  { %196 = vst.msk [vmem:[%s540_s1 + $0xe0] sm:$0xff] %vm167_vm0, %v99_v63 }
 0x19a   :  { %v164_v0 = vpop.trf.xlu1 }
 0x19b   :  { %229 = vst.msk [vmem:[%s540_s1 + $0x1e8] sm:$0xff] %vm167_vm0, %v164_v0  ;;  %v100_v1 = vpop.trf.xlu0 }
 0x19c   :  { %197 = vst.msk [vmem:[%s540_s1 + $0xe8] sm:$0xff] %vm167_vm0, %v100_v1 }
 0x1a2   :  { %v165_v2 = vpop.trf.xlu1 }
 0x1a3   :  { %230 = vst.msk [vmem:[%s540_s1 + $0x1f0] sm:$0xff] %vm167_vm0, %v165_v2  ;;  %v101_v3 = vpop.trf.xlu0 }
 0x1a4   :  { %198 = vst.msk [vmem:[%s540_s1 + $0xf0] sm:$0xff] %vm167_vm0, %v101_v3 }
 0x1aa   :  { %v166_v4 = vpop.trf.xlu1 }
 0x1ab   :  { %231 = vst.msk [vmem:[%s540_s1 + $0x1f8] sm:$0xff] %vm167_vm0, %v166_v4  ;;  %v102_v5 = vpop.trf.xlu0 }
 0x1ac   :  { %199 = vst.msk [vmem:[%s540_s1 + $0xf8] sm:$0xff] %vm167_vm0, %v102_v5 }
 0x1ad   :  { %236 = vsyncpa [#allocation3], 1 }

</bundles_post_ra>
